<compile_context>
chip_gen: v7x
topology: tpu7x:2x2x1
jax: 0.10.0
libtpu: 0.0.40
codegen_flags: <defaults>
</compile_context>

<pallas_src>
import jax
import jax.numpy as jnp
from jax.experimental import pallas as pl
from jax.experimental.pallas import tpu as pltpu


def _mlp_kernel(x_ref, w0_ref, b0_ref, w1_ref, b1_ref, ot_ref):
    """One batch tile, batch on the lane / MXU-N dimension.

    x_ref:  (tile_b, D) f32        streamed over the batch grid axis
    w0_ref: (H, D)  bf16 resident  b0_ref: (H, 1) f32 resident
    w1_ref: (O, H)  bf16 resident  b1_ref: (O, 1) f32 resident
    ot_ref: (O, tile_b)            lane-dense output block
    """
    # (tile_b, D) -> (D, tile_b): one XLU transpose, then bf16 for the MXU
    # (f32 accumulation); all element-wise math stays f32 on the VPU.
    x_t = jnp.transpose(x_ref[...]).astype(jnp.bfloat16)          # (D, tile_b)

    h_t = jnp.dot(w0_ref[...], x_t,
                  preferred_element_type=jnp.float32)             # (H, tile_b)
    h_t = jnp.maximum(h_t + b0_ref[...], 0.0)                     # bias + ReLU

    l_t = jnp.dot(w1_ref[...], h_t.astype(jnp.bfloat16),
                  preferred_element_type=jnp.float32)             # (O, tile_b)
    l_t = l_t + b1_ref[...]

    # Numerically-stable softmax over the O sublane rows (axis 0).
    m = jnp.max(l_t, axis=0, keepdims=True)                       # (1, tile_b)
    e = jnp.exp(l_t - m)
    denom = jnp.sum(e, axis=0, keepdims=True)
    # Exact divide so rows sum to 1 (approx reciprocal would break strict
    # normalization); on lane-dense vregs this is essentially free.
    ot_ref[...] = (e / denom).astype(ot_ref.dtype)


def prepare_params(w0, b0, w1, b1):
    """One-time parameter prep (hoisted out of the per-call wrapper).

    PyTorch nn.Linear layout: w0 (H, D), b0 (H,), w1 (O, H), b1 (O,).
    Weights -> bf16 (MXU-native), biases -> f32 column vectors.
    """
    return (w0.astype(jnp.bfloat16),
            b0.reshape(-1, 1).astype(jnp.float32),
            w1.astype(jnp.bfloat16),
            b1.reshape(-1, 1).astype(jnp.float32))


def _pick_tile_b(B, block_b):
    """Lane-dense (O, tile_b) output blocks need tile_b % 128 == 0 or tile_b == B."""
    if B <= 256:
        return B                              # single grid step for tiny batches
    half = pl.cdiv(B, 2)                      # aim for >= 2 grid steps so both
    half = pl.cdiv(half, 128) * 128           # v7x TensorCores engage (megacore)
    tile = min(block_b, half)
    return max(128, (tile // 128) * 128)


def simple_mlp_forward(x, params, *, block_b=4096):
    """x: (B, D); params from prepare_params(). Returns softmax probs (B, O).

    block_b=4096 is safe on v7x (64 MiB VMEM, 32 MiB default scoped limit);
    on v5e/v6e (128 MiB VMEM) it can be raised to ~8192.
    """
    w0, b0c, w1, b1c = params
    B, D = x.shape
    H = w0.shape[0]
    O = w1.shape[0]

    tile_b = _pick_tile_b(B, block_b)
    grid = (pl.cdiv(B, tile_b),)

    resident = lambda shape: pl.BlockSpec(shape, lambda i: (0,) * len(shape))

    cost = pl.CostEstimate(
        flops=2 * B * (D * H + H * O),
        transcendentals=B * O,                                   # exp
        bytes_accessed=4 * B * D + 4 * B * O                     # x read, out write
                       + 2 * (D * H + H * O) + 4 * (H + O),      # weights, biases
    )

    out_t = pl.pallas_call(
        _mlp_kernel,
        out_shape=jax.ShapeDtypeStruct((O, B), x.dtype),         # lane-dense (O, B)
        grid=grid,
        in_specs=[
            pl.BlockSpec((tile_b, D), lambda i: (i, 0)),         # x streams over batch
            resident((H, D)),                                    # w0 resident in VMEM
            resident((H, 1)),                                    # b0 resident
            resident((O, H)),                                    # w1 resident
            resident((O, 1)),                                    # b1 resident
        ],
        out_specs=pl.BlockSpec((O, tile_b), lambda i: (0, i)),
        compiler_params=pltpu.CompilerParams(
            dimension_semantics=("parallel",),                   # megacore on v7x
        ),
        cost_estimate=cost,
    )(x, w0, b0c, w1, b1c)

    return jnp.transpose(out_t)                                  # tiny (O, B) -> (B, O)


def _init_params(key, inp_units, out_units=2, dtype=jnp.float32):
    """nn.Linear-style uniform(-1/sqrt(fan_in), +1/sqrt(fan_in)) init, PyTorch layout."""
    hid = inp_units // 2
    k0w, k0b, k1w, k1b = jax.random.split(key, 4)
    lim0 = 1.0 / (inp_units ** 0.5)
    lim1 = 1.0 / (hid ** 0.5)
    w0 = jax.random.uniform(k0w, (hid, inp_units), dtype, -lim0, lim0)   # (H, D)
    b0 = jax.random.uniform(k0b, (hid,), dtype, -lim0, lim0)
    w1 = jax.random.uniform(k1w, (out_units, hid), dtype, -lim1, lim1)   # (O, H)
    b1 = jax.random.uniform(k1b, (out_units,), dtype, -lim1, lim1)
    return w0, b0, w1, b1


def _reference(x, w0, b0, w1, b1):
    h = jnp.maximum(x @ w0.T + b0, 0.0)
    logits = h @ w1.T + b1
    return jax.nn.softmax(logits, axis=-1)


if __name__ == "__main__":
    key = jax.random.PRNGKey(0)
    kx1, kx2, kp = jax.random.split(key, 3)

    inp_units, out_units = 32, 2          # simple_MLP(inp_units=32, out_units=2)
    w0, b0, w1, b1 = _init_params(kp, inp_units, out_units)
    params = prepare_params(w0, b0, w1, b1)

    # Case 1: tiny batch -> single grid step (tile_b == B == 24).
    B1 = 24
    x1 = jax.random.normal(kx1, (B1, inp_units), jnp.float32)
    out1 = jax.block_until_ready(simple_mlp_forward(x1, params))
    ref1 = _reference(x1, w0, b0, w1, b1)
    assert out1.shape == (B1, out_units)
    assert jnp.allclose(out1, ref1, atol=2e-2, rtol=2e-2), "mismatch vs f32 reference (B=24)"
    assert jnp.allclose(jnp.sum(out1, axis=-1), 1.0, atol=1e-3)

    # Case 2: B=384 -> tile_b=256, 2 grid steps, masked tail on the last block.
    B2 = 384
    x2 = jax.random.normal(kx2, (B2, inp_units), jnp.float32)
    out2 = jax.block_until_ready(simple_mlp_forward(x2, params))
    ref2 = _reference(x2, w0, b0, w1, b1)
    assert out2.shape == (B2, out_units)
    assert jnp.allclose(out2, ref2, atol=2e-2, rtol=2e-2), "mismatch vs f32 reference (B=384)"
    assert jnp.allclose(jnp.sum(out2, axis=-1), 1.0, atol=1e-3)

    print("KERNEL_OK")
</pallas_src>

<mosaic_0001>
module attributes {stable_mosaic.version = 11 : i64} {
  func.func @_mlp_kernel(%arg0: i32, %arg1: memref<24x32xf32, #tpu.memory_space<vmem>>, %arg2: memref<16x32xbf16, #tpu.memory_space<vmem>>, %arg3: memref<16x1xf32, #tpu.memory_space<vmem>>, %arg4: memref<2x16xbf16, #tpu.memory_space<vmem>>, %arg5: memref<2x1xf32, #tpu.memory_space<vmem>>, %arg6: memref<2x24xf32, #tpu.memory_space<vmem>>) attributes {dimension_semantics = [#tpu.dimension_semantics<parallel>], iteration_bounds = array<i64: 1>, scalar_prefetch = 0 : i64, scratch_operands = 0 : i64, tpu.core_type = #tpu.core_type<tc>, window_params = [{transform_indices = @transform_0, window_bounds = array<i64: 24, 32>}, {pipeline_mode = #tpu.pipeline_mode<synchronous>, transform_indices = @transform_1, window_bounds = array<i64: 16, 32>}, {pipeline_mode = #tpu.pipeline_mode<synchronous>, transform_indices = @transform_2, window_bounds = array<i64: 16, 1>}, {pipeline_mode = #tpu.pipeline_mode<synchronous>, transform_indices = @transform_3, window_bounds = array<i64: 2, 16>}, {pipeline_mode = #tpu.pipeline_mode<synchronous>, transform_indices = @transform_4, window_bounds = array<i64: 2, 1>}, {transform_indices = @transform_5, window_bounds = array<i64: 2, 24>}]} {
    %c0 = arith.constant 0 : index
    %c0_0 = arith.constant 0 : index
    %0 = vector.load %arg1[%c0, %c0_0] : memref<24x32xf32, #tpu.memory_space<vmem>>, vector<24x32xf32>
    %1 = tpu.transpose %0, [1, 0] : vector<24x32xf32> -> vector<32x24xf32>
    %2 = arith.truncf %1 : vector<32x24xf32> to vector<32x24xbf16>
    %c0_1 = arith.constant 0 : index
    %c0_2 = arith.constant 0 : index
    %3 = vector.load %arg2[%c0_1, %c0_2] : memref<16x32xbf16, #tpu.memory_space<vmem>>, vector<16x32xbf16>
    %cst = arith.constant dense<0.000000e+00> : vector<16x24xf32>
    %4 = tpu.matmul %3, %2, %cst {dimension_numbers = #tpu.dot_dimension_numbers<[1], [0], [0], [1], [0, 0, 1, 1], [], []>} : vector<16x32xbf16>, vector<32x24xbf16>, vector<16x24xf32> -> vector<16x24xf32>
    %c0_3 = arith.constant 0 : index
    %c0_4 = arith.constant 0 : index
    %5 = vector.load %arg3[%c0_3, %c0_4] : memref<16x1xf32, #tpu.memory_space<vmem>>, vector<16x1xf32>
    %6 = vector.broadcast %5 : vector<16x1xf32> to vector<16x24xf32>
    %7 = arith.addf %4, %6 : vector<16x24xf32>
    %cst_5 = arith.constant 0.000000e+00 : f32
    %8 = vector.broadcast %cst_5 : f32 to vector<16x24xf32>
    %9 = arith.maximumf %7, %8 : vector<16x24xf32>
    %c0_6 = arith.constant 0 : index
    %c0_7 = arith.constant 0 : index
    %10 = vector.load %arg4[%c0_6, %c0_7] : memref<2x16xbf16, #tpu.memory_space<vmem>>, vector<2x16xbf16>
    %11 = arith.truncf %9 : vector<16x24xf32> to vector<16x24xbf16>
    %cst_8 = arith.constant dense<0.000000e+00> : vector<2x24xf32>
    %12 = tpu.matmul %10, %11, %cst_8 {dimension_numbers = #tpu.dot_dimension_numbers<[1], [0], [0], [1], [0, 0, 1, 1], [], []>} : vector<2x16xbf16>, vector<16x24xbf16>, vector<2x24xf32> -> vector<2x24xf32>
    %c0_9 = arith.constant 0 : index
    %c0_10 = arith.constant 0 : index
    %13 = vector.load %arg5[%c0_9, %c0_10] : memref<2x1xf32, #tpu.memory_space<vmem>>, vector<2x1xf32>
    %14 = vector.broadcast %13 : vector<2x1xf32> to vector<2x24xf32>
    %15 = arith.addf %12, %14 : vector<2x24xf32>
    %cst_11 = arith.constant dense<0xFF800000> : vector<24xf32>
    %16 = vector.multi_reduction <maximumf>, %15, %cst_11 [0] : vector<2x24xf32> to vector<24xf32>
    %17 = vector.shape_cast %16 : vector<24xf32> to vector<1x24xf32>
    %18 = vector.broadcast %17 : vector<1x24xf32> to vector<2x24xf32>
    %19 = arith.subf %15, %18 : vector<2x24xf32>
    %20 = math.exp %19 : vector<2x24xf32>
    %cst_12 = arith.constant dense<0.000000e+00> : vector<24xf32>
    %21 = vector.multi_reduction <add>, %20, %cst_12 [0] : vector<2x24xf32> to vector<24xf32>
    %22 = vector.shape_cast %21 : vector<24xf32> to vector<1x24xf32>
    %23 = vector.broadcast %22 : vector<1x24xf32> to vector<2x24xf32>
    %24 = arith.divf %20, %23 : vector<2x24xf32>
    %c0_13 = arith.constant 0 : index
    %c0_14 = arith.constant 0 : index
    %25 = vector.load %arg6[%c0_13, %c0_14] : memref<2x24xf32, #tpu.memory_space<vmem>>, vector<2x24xf32>
    tpu.vector_store %arg6[%c0_13, %c0_14], %24 {strides = array<i32>} : memref<2x24xf32, #tpu.memory_space<vmem>>, vector<2x24xf32>,
    return
  }
  func.func @transform_0(%arg0: i32) -> (i32, i32) {
    %c0_i32 = arith.constant 0 : i32
    %c0_i32_0 = arith.constant 0 : i32
    return %arg0, %c0_i32 : i32, i32
  }
  func.func @transform_1(%arg0: i32) -> (i32, i32) {
    %c0_i32 = arith.constant 0 : i32
    %c0_i32_0 = arith.constant 0 : i32
    %c0_i32_1 = arith.constant 0 : i32
    return %c0_i32, %c0_i32_0 : i32, i32
  }
  func.func @transform_2(%arg0: i32) -> (i32, i32) {
    %c0_i32 = arith.constant 0 : i32
    %c0_i32_0 = arith.constant 0 : i32
    %c0_i32_1 = arith.constant 0 : i32
    return %c0_i32, %c0_i32_0 : i32, i32
  }
  func.func @transform_3(%arg0: i32) -> (i32, i32) {
    %c0_i32 = arith.constant 0 : i32
    %c0_i32_0 = arith.constant 0 : i32
    %c0_i32_1 = arith.constant 0 : i32
    return %c0_i32, %c0_i32_0 : i32, i32
  }
  func.func @transform_4(%arg0: i32) -> (i32, i32) {
    %c0_i32 = arith.constant 0 : i32
    %c0_i32_0 = arith.constant 0 : i32
    %c0_i32_1 = arith.constant 0 : i32
    return %c0_i32, %c0_i32_0 : i32, i32
  }
  func.func @transform_5(%arg0: i32) -> (i32, i32) {
    %c0_i32 = arith.constant 0 : i32
    %c0_i32_0 = arith.constant 0 : i32
    return %c0_i32, %arg0 : i32, i32
  }
}

</mosaic_0001>

<bundles_post_ra>
// kernel: tpu_custom_call.1
= control target key start
LH: loop header
LB: loop body
LE: loop exit
PB: predicated region body
PF: predicated region fallthrough
CT: control target
= control target key end

     0   :  { %10 = vsyncpa [#allocation3], 0  ;;  %s390_s0 = inlined_call_operand.hbm [shape: f32[24,32], index: 0, kind: input, shape index: {}]   ;;  %s391_s1 = inlined_call_operand.vmem [shape: bf16[16,32], index: 1, kind: input, shape index: {}]   ;;  %s392_s2 = inlined_call_operand.vmem [shape: f32[16,1], index: 2, kind: input, shape index: {}]   ;;  %s393_s3 = inlined_call_operand.vmem [shape: bf16[2,16], index: 3, kind: input, shape index: {}]   ;;  %s394_s4 = inlined_call_operand.vmem [shape: f32[2,1], index: 4, kind: input, shape index: {}]   ;;  %s395_s5 = inlined_call_operand.hbm [shape: f32[2,24], index: 5, kind: output, shape index: {}]  }
   0x1   :  { %11 = vsyncpa [#allocation4], 0  ;;  %s311_s18 = smov [#allocation2]   ;;  %s263_s22 = scalar_lea.hbm %s390_s0, 384 }
   0x2   :  { %s17_s19 = sshll.u32 %s311_s18, 4  ;;  %p264_p0 = scmp.ne.s32.totalorder %s390_s0, %s263_s22  ;;  %s18_s19 = int_to_ptr.vmem [resolvable:$true] %s17_s19 }
   0x3   :  { %p267_p1 = scmp.lt.u32.totalorder %s263_s22, %s390_s0 }
   0x5   :  { %p269_p2 = pnand %p267_p1, %p264_p0 }
   0x7   :  { %272 = shalt.err (!%p269_p2)
}
   0x8   :  { %s273_s27 = scalar_lea.vmem %s18_s19, 384  ;;  %p278_p4 = scmp.lt.s32.totalorder %s18_s19, %s18_s19 }
   0x9   :  { %p274_p3 = scmp.ne.s32.totalorder %s18_s19, %s273_s27  ;;  %p279_p5 = scmp.lt.s32.totalorder %s273_s27, %s273_s27 }
   0xb   :  { %p280_p6 = por %p279_p5, %p278_p4 }
   0xd   :  { %p281_p7 = pnand %p280_p6, %p274_p3 }
   0xf   :  { %284 = shalt.err (!%p281_p7)
}
  0x10   :  { %s312_s28 = smov 128   ;;  %s313_s29 = smov 8  }
  0x11   :  { %23 = dma.hbm_to_vmem [thread:$0]  %s390_s0, 384, %s18_s19, [#allocation3], %s312_s28, %s312_s28, %s313_s29  }
  0x12   :  { %307 = dma.done.wait [#allocation3], 384  }
  0x13   :  { %308 = vsyncadd [#allocation3], 4294966912  ;;  %v36_v0 = vld [vmem:[#allocation2] sm:$0xff]  ;;  %v37_v1 = vld [vmem:[#allocation2 + $0x8] sm:$0xff]  ;;  %v314_v3 = vmov 0.0   ;;  %vm315_vm0 = vmmov 0  }
  0x14   :  { %39 = vxpose.xlu0.b32.start [1/3] (short) (narrow) %v36_v0, 32  ;;  %v38_v2 = vld [vmem:[#allocation2 + $0x10] sm:$0xff]  ;;  %235 = vmatprep.subr.bf16.mxu0 %v314_v3  ;;  %v75_v4 = vld [vmem:[%s392_s2] sm:$0xff]  ;;  %v316_v5 = vmov 0   ;;  %v76_v6 = vld [vmem:[%s392_s2 + $0x8] sm:$0xff]  ;;  %vm92_vm1 = vcmask 261120  }
  0x15   :  { %243 = vmatprep.subr.bf16.mxu1 %v314_v3  ;;  %239 = vmatprep.mubr.msk.bf16.mxu0 %vm315_vm0, %v314_v3  ;;  %v141_v7 = vld [vmem:[%s394_s4] sm:$0x3]  ;;  %vm147_vm2 = vcmask 130048   ;;  %vm191_vm3 = vcmask 189440  }
  0x16   :  { %245 = vmatprep.mubr.msk.bf16.mxu1 %vm315_vm0, %v314_v3  ;;  %256 = vset.pattern.permute.xlu1 %v316_v5  ;;  %v258_v14 = vld [vmem:[%s391_s1] sm:$0xff]   ;;  %s317_s1 = smov [#allocation5]  }
  0x17   :  { %79 = vperm.xlu1 %256, %v75_v4   ;;  %v139_v26 = vld [vmem:[%s393_s3] sm:$0x1]  ;;  %s218_s3 = sshll.u32 %s317_s1, 4  ;;  %s219_s3 = int_to_ptr.vmem [resolvable:$true] %s218_s3 }
  0x18   :  { %40 = vxpose.xlu0.b32.cont [2/3] (short) (narrow) %v37_v1, 32  ;;  %s285_s14 = scalar_lea.vmem %s219_s3, 32  ;;  %p290_p9 = scmp.lt.s32.totalorder %s219_s3, %s219_s3 }
  0x19   :  { %p286_p8 = scmp.ne.s32.totalorder %s219_s3, %s285_s14  ;;  %p291_p10 = scmp.lt.s32.totalorder %s285_s14, %s285_s14 }
  0x1b   :  { %84 = vperm.xlu1 %256, %v76_v6   ;;  %p292_p11 = por %p291_p10, %p290_p9 }
  0x1c   :  { %41 = vxpose.xlu0.b32.end [3/3] (short) (narrow) %v38_v2, 32 }
  0x1d   :  { %p293_p12 = pnand %p292_p11, %p286_p8 }
  0x1f   :  { %144 = vperm.xlu1 %256, %v141_v7  }
  0x45   :  { %257 = vset.pattern.permute.xlu0 %v316_v5 }
  0x94   :  { %v55_v8 = vpop.trf.xlu0 }
  0x96   :  { %v80_v15 = vpop.permute.xlu1 %79 }
  0x98   :  { %v56_v9 = vpop.trf.xlu0 }
  0x99   :  { %v71_v10 = vpack.c.bf16 %v56_v9, %v55_v8 }
  0x9a   :  { %v85_v19 = vpop.permute.xlu1 %84 }
  0x9b   :  { %236 = vmatpush3.bf16.msra.mxu0 %v71_v10 }
  0x9c   :  { %v57_v11 = vpop.trf.xlu0  ;;  %237 = vmatprep.subr.bf16.mxu0 %v314_v3 }
  0x9e   :  { %v145_v27 = vpop.permute.xlu1 %144 }
  0xa0   :  { %v58_v12 = vpop.trf.xlu0 }
  0xa1   :  { %v72_v13 = vpack.c.bf16 %v58_v12, %v57_v11 }
  0xa3   :  { %238 = vmatpush3.bf16.msra.mxu0 %v72_v13 }
  0xa6   :  { %240 = vmatmul.mubr.msk.bf16.vlgmr.msra.gmra.mrb[0].mxu0 %vm92_vm1, %v258_v14 }
 0x179   :  { %v130_v16 = vpop.f32.mrb[0].mxu0 }
 0x17a   :  { %v131_v17 = vadd.f32 %v130_v16, %v80_v15  ;;  %v241_v18 = vpop.f32.mrb[1].mxu0 }
 0x17b   :  { %v133_v20 = vpop.f32.mrb[2].mxu0 }
 0x17c   :  { %v134_v21 = vadd.f32 %v133_v20, %v85_v19  ;;  %v242_v22 = vpop.f32.mrb[3].mxu0  ;;  %v137_v23 = vmax.f32 %v131_v17, 0.0 }
 0x17e   :  { %v138_v24 = vmax.f32 %v134_v21, 0.0 }
 0x180   :  { %v140_v25 = vpack.c.bf16 %v138_v24, %v137_v23 }
 0x182   :  { %244 = vmatpush3.bf16.msra.mxu1 %v140_v25 }
 0x185   :  { %246 = vmatmul.mubr.msk.bf16.vlgmr.msra.gmra.mrb[0].mxu1 %vm147_vm2, %v139_v26 }
 0x258   :  { %v185_v28 = vpop.f32.mrb[0].mxu1 }
 0x259   :  { %v186_v29 = vadd.f32 %v185_v28, %v145_v27  ;;  %v247_v30 = vpop.f32.mrb[1].mxu1 }
 0x25a   :  { %v188_v31 = vpop.f32.mrb[2].mxu1 }
 0x25b   :  { %v192_v32 = vsel %vm191_vm3, %v186_v29, -inf  ;;  %v248_v33 = vpop.f32.mrb[3].mxu1 }
 0x25c   :  { %v193_v34 = vrot.slane %v192_v32, 4 }
 0x25e   :  { %v194_v35 = vmax.f32 %v192_v32, %v193_v34 }
 0x260   :  { %v195_v36 = vrot.slane %v194_v35, 2 }
 0x262   :  { %v196_v37 = vmax.f32 %v194_v35, %v195_v36 }
 0x264   :  { %v197_v38 = vrot.slane %v196_v37, 1 }
 0x266   :  { %v198_v39 = vmax.f32 %v196_v37, %v197_v38 }
 0x268   :  { %v199_v40 = vsub.f32 %v186_v29, %v198_v39 }
 0x26a   :  { %v200_v41 = vmul.f32 1.442695, %v199_v40 }
 0x26c   :  { %259 = vpow2.f32 %v200_v41 }
 0x276   :  { %v260_v42 = vpop.eup %259 }
 0x277   :  { %v202_v43 = vsel %vm191_vm3, %v260_v42, 0.0 }
 0x278   :  { %v203_v44 = vrot.slane %v202_v43, 4 }
 0x27a   :  { %v204_v45 = vadd.f32 %v203_v44, %v202_v43 }
 0x27c   :  { %v205_v46 = vrot.slane %v204_v45, 2 }
 0x27e   :  { %v206_v47 = vadd.f32 %v205_v46, %v204_v45 }
 0x280   :  { %v207_v48 = vrot.slane %v206_v47, 1 }
 0x282   :  { %v208_v49 = vadd.f32 %v207_v48, %v206_v47 }
 0x284   :  { %261 = vrcp.f32 %v208_v49 }
 0x28e   :  { %v262_v50 = vpop.eup %261 }
 0x28f   :  { %v210_v51 = vmul.f32 %v262_v50, %v260_v42 }
 0x291   :  { %211 = vst.msk [vmem:[#allocation5] sm:$0x3] %vm191_vm3, %v210_v51 }
 0x292   :  { %296 = shalt.err (!%p293_p12)
}
 0x293   :  { %s297_s17 = scalar_lea.hbm %s395_s5, 32 }
 0x294   :  { %p298_p13 = scmp.ne.s32.totalorder %s395_s5, %s297_s17  ;;  %p301_p0 = scmp.lt.u32.totalorder %s297_s17, %s395_s5 }
 0x296   :  { %p303_p1 = pnand %p301_p0, %p298_p13 }
 0x298   :  { %306 = shalt.err (!%p303_p1)
}
 0x299   :  { %221 = dma.vmem_to_hbm [thread:$0]  %s219_s3, 32, %s395_s5, [#allocation4]  }
 0x29a   :  { %309 = dma.done.wait [#allocation4], 32  }
 0x29b   :  { %310 = vsyncadd [#allocation4], 4294967264 }
 0x29c   :  { %225 = vsyncpa [#allocation3], 1 }
 0x29d   :  { %226 = vsyncpa [#allocation4], 1 }

</bundles_post_ra>
